<compile_context>
chip_gen: v5e
topology: v5e:2x2
jax: 0.10.0
libtpu: 0.0.40
codegen_flags: <defaults>
</compile_context>

<pallas_src>
import jax
import jax.numpy as jnp
from jax.experimental import pallas as pl
from jax.experimental.pallas import tpu as pltpu

_TARGET_TILE_BYTES = 4 * 1024 * 1024     # ~4 MiB per block buffer (review: 2-4 MiB)
_LANE_CHOICES = (1024, 512, 256, 128)    # lane-dense last dims (multiples of 128)


def _round_up(a: int, b: int) -> int:
    return (a + b - 1) // b * b


def _sublane_multiple(dtype) -> int:
    itemsize = jnp.dtype(dtype).itemsize
    return {4: 8, 2: 16, 1: 32}.get(itemsize, 8)


def linear_kernel(w_ref, b_ref, x_ref, o_ref):
    # w_ref / b_ref: (1,) scalars in SMEM; x_ref / o_ref: (tile_rows, lanes) VMEM tiles.
    o_ref[...] = x_ref[...] * w_ref[0] + b_ref[0]


def linear_regression_forward(x, weight, bias, *, min_pallas_n=1 << 20):
    """Pallas equivalent of nn.Linear(1, 1) forward.

    x:      (N, 1) float32
    weight: (1, 1) float32  (PyTorch layout: (out_features, in_features))
    bias:   (1,)   float32
    returns (N, 1) float32
    """
    n = x.shape[0]
    w_scalar = weight.reshape((1,))
    b_scalar = bias.reshape((1,))

    # The op is pure HBM-bandwidth elementwise FMA. XLA's fused x*w+b is
    # already at the roofline with zero extra copies, so only take the Pallas
    # path when (a) N is large enough that per-call overhead is negligible and
    # (b) N reshapes for free (no pad / slice copies) into a lane-dense slab.
    lanes = next((l for l in _LANE_CHOICES if n % l == 0), None)
    if n < min_pallas_n or lanes is None:
        return x * w_scalar[0] + b_scalar[0]

    sublane = _sublane_multiple(x.dtype)
    itemsize = jnp.dtype(x.dtype).itemsize
    rows = n // lanes
    slab = x.reshape(rows, lanes)            # free reshape: no pad, no copy

    if rows <= sublane:
        # Single block covering the whole (tiny) slab; rows == full array dim,
        # so the (8, 128) block-shape divisibility rule does not apply.
        tile_rows = rows
    else:
        max_tile_rows = max(
            sublane,
            (_TARGET_TILE_BYTES // (lanes * itemsize)) // sublane * sublane,
        )
        # Aim for >= 2 grid steps so the "parallel" axis gives both v7x
        # TensorCores work; partial last blocks are handled by Pallas.
        tile_rows = min(max_tile_rows, _round_up(pl.cdiv(rows, 2), sublane))
    grid = (pl.cdiv(rows, tile_rows),)

    tile_bytes = tile_rows * lanes * itemsize
    # 2 arrays (in + out) x 2 pipeline buffers x tile_bytes plus slack; never
    # below the 32 MiB default scoped VMEM on v6e/v7x (and above v5e's 16 MiB
    # default so larger tiles do not trip the limit there).
    vmem_limit = max(32 * 1024 * 1024, 4 * tile_bytes + 8 * 1024 * 1024)

    out_slab = pl.pallas_call(
        linear_kernel,
        out_shape=jax.ShapeDtypeStruct((rows, lanes), x.dtype),
        grid_spec=pltpu.PrefetchScalarGridSpec(
            num_scalar_prefetch=0,
            grid=grid,
            in_specs=[
                pl.BlockSpec(memory_space=pltpu.MemorySpace.SMEM),  # weight scalar
                pl.BlockSpec(memory_space=pltpu.MemorySpace.SMEM),  # bias scalar
                pl.BlockSpec((tile_rows, lanes), lambda i: (i, 0)),
            ],
            out_specs=pl.BlockSpec((tile_rows, lanes), lambda i: (i, 0)),
        ),
        compiler_params=pltpu.CompilerParams(
            dimension_semantics=("parallel",),
            vmem_limit_bytes=vmem_limit,
        ),
    )(w_scalar, b_scalar, slab)

    return out_slab.reshape(n, 1)            # free reshape back to (N, 1)


if __name__ == "__main__":
    key = jax.random.PRNGKey(0)
    kw, kb, kx1, kx2, kx3 = jax.random.split(key, 5)

    # Deterministic parameters (same shapes as nn.Linear(1, 1)).
    weight = jax.random.uniform(kw, (1, 1), dtype=jnp.float32, minval=-1.0, maxval=1.0)
    bias = jax.random.uniform(kb, (1,), dtype=jnp.float32, minval=-1.0, maxval=1.0)

    # 1) Tiny batch (PyTorch demo scale) -> fused-JAX fast path.
    x_small = jax.random.normal(kx1, (8, 1), dtype=jnp.float32)
    y_small = linear_regression_forward(x_small, weight, bias)
    jax.block_until_ready(y_small)
    ref_small = x_small @ weight.T + bias
    assert y_small.shape == (8, 1)
    assert jnp.allclose(y_small, ref_small, atol=1e-6), "small-N mismatch vs reference"

    # 2) Lane-aligned batch, Pallas path forced (min_pallas_n=0): 16 rows of
    #    1024 lanes -> 2 grid steps, exercises tiling + the megacore split.
    n_pallas = 16 * 1024
    x_pallas = jax.random.normal(kx2, (n_pallas, 1), dtype=jnp.float32)
    y_pallas = linear_regression_forward(x_pallas, weight, bias, min_pallas_n=0)
    jax.block_until_ready(y_pallas)
    ref_pallas = x_pallas @ weight.T + bias
    assert y_pallas.shape == (n_pallas, 1)
    assert jnp.allclose(y_pallas, ref_pallas, atol=1e-6), "pallas mismatch vs reference"

    # 3) Ragged batch (not a multiple of 128) -> zero-copy fused fallback.
    n_ragged = 1000
    x_ragged = jax.random.normal(kx3, (n_ragged, 1), dtype=jnp.float32)
    y_ragged = linear_regression_forward(x_ragged, weight, bias, min_pallas_n=0)
    jax.block_until_ready(y_ragged)
    ref_ragged = x_ragged @ weight.T + bias
    assert jnp.allclose(y_ragged, ref_ragged, atol=1e-6), "ragged-N mismatch vs reference"

    print("KERNEL_OK")
</pallas_src>

<mosaic_0001>
module attributes {stable_mosaic.version = 11 : i64} {
  func.func @linear_kernel(%arg0: i32, %arg1: memref<1xf32, #tpu.memory_space<smem>>, %arg2: memref<1xf32, #tpu.memory_space<smem>>, %arg3: memref<8x1024xf32, #tpu.memory_space<vmem>>, %arg4: memref<8x1024xf32, #tpu.memory_space<vmem>>) attributes {dimension_semantics = [#tpu.dimension_semantics<parallel>], iteration_bounds = array<i64: 2>, scalar_prefetch = 0 : i64, scratch_operands = 0 : i64, tpu.core_type = #tpu.core_type<tc>, window_params = [{transform_indices = @transform_0, window_bounds = array<i64: 1>}, {transform_indices = @transform_1, window_bounds = array<i64: 1>}, {transform_indices = @transform_2, window_bounds = array<i64: 8, 1024>}, {transform_indices = @transform_3, window_bounds = array<i64: 8, 1024>}]} {
    %c0 = arith.constant 0 : index
    %c0_0 = arith.constant 0 : index
    %0 = vector.load %arg3[%c0, %c0_0] : memref<8x1024xf32, #tpu.memory_space<vmem>>, vector<8x1024xf32>
    %c0_1 = arith.constant 0 : index
    %1 = memref.load %arg1[%c0_1] : memref<1xf32, #tpu.memory_space<smem>>
    %2 = vector.broadcast %1 : f32 to vector<8x1024xf32>
    %3 = arith.mulf %0, %2 : vector<8x1024xf32>
    %c0_2 = arith.constant 0 : index
    %4 = memref.load %arg2[%c0_2] : memref<1xf32, #tpu.memory_space<smem>>
    %5 = vector.broadcast %4 : f32 to vector<8x1024xf32>
    %6 = arith.addf %3, %5 : vector<8x1024xf32>
    %c0_3 = arith.constant 0 : index
    %c0_4 = arith.constant 0 : index
    %7 = vector.load %arg4[%c0_3, %c0_4] : memref<8x1024xf32, #tpu.memory_space<vmem>>, vector<8x1024xf32>
    tpu.vector_store %arg4[%c0_3, %c0_4], %6 {strides = array<i32>} : memref<8x1024xf32, #tpu.memory_space<vmem>>, vector<8x1024xf32>,
    return
  }
  func.func @transform_0(%arg0: i32) -> i32 {
    %c0_i32 = arith.constant 0 : i32
    %c0_i32_0 = arith.constant 0 : i32
    return %c0_i32 : i32
  }
  func.func @transform_1(%arg0: i32) -> i32 {
    %c0_i32 = arith.constant 0 : i32
    %c0_i32_0 = arith.constant 0 : i32
    return %c0_i32 : i32
  }
  func.func @transform_2(%arg0: i32) -> (i32, i32) {
    %c0_i32 = arith.constant 0 : i32
    %c0_i32_0 = arith.constant 0 : i32
    return %arg0, %c0_i32 : i32, i32
  }
  func.func @transform_3(%arg0: i32) -> (i32, i32) {
    %c0_i32 = arith.constant 0 : i32
    %c0_i32_0 = arith.constant 0 : i32
    return %arg0, %c0_i32 : i32, i32
  }
}

</mosaic_0001>

<bundles_post_ra>
// kernel: tpu_custom_call.1
= control target key start
LH: loop header
LB: loop body
LE: loop exit
PB: predicated region body
PF: predicated region fallthrough
CT: control target
= control target key end

     0   :  { %s631_s0 = inlined_call_operand.<no memory space> [shape: f32[1], index: 0, kind: input, shape index: {}]   ;;  %s632_s1 = inlined_call_operand.<no memory space> [shape: f32[1], index: 1, kind: input, shape index: {}]   ;;  %s633_s2 = inlined_call_operand.hbm [shape: f32[16,1024], index: 2, kind: input, shape index: {}]   ;;  %s634_s3 = inlined_call_operand.hbm [shape: f32[16,1024], index: 3, kind: output, shape index: {}]  }
   0x1   :  { %8 = sst [smem:[#allocation2]] %s631_s0 }
   0x2   :  { %9 = sst [smem:[#allocation3]] %s632_s1 }
   0x3   :  { %10 = vsyncpa [#allocation5], 0 }
   0x4   :  { %12 = vsyncpa [#allocation5 + $0x1], 0 }
   0x5   :  { %13 = vsyncpa [#allocation6], 0 }
   0x6   :  { %15 = vsyncpa [#allocation6 + $0x1], 0  ;;  %s500_s16 = smov 0   ;;  %s502_s17 = smov 0  }
   0x7   :  { %s504_s18 = smov 0   ;;  %s506_s19 = smov 0  }
   0x8 LB: > { %s521_s0 = sadd.s32 4294967295, %s472_s19   ;;  %s314_s1 = sadd.s32 4294967294, %s472_s19   ;;  %s472_s19 = sphi %s506_s19, %s644_s19   ;;  %s468_s18 = sphi %s504_s18, %s643_s18   ;;  %s464_s17 = sphi %s502_s17, %s642_s17   ;;  %s460_s16 = sphi %s500_s16, %s641_s16  }
   0x9   : > { %s525_s20 = sadd.s32 1, %s472_s19   ;;  %s70_s21 = sadd.s32 1, %s468_s18 }
   0xa   : > { %s67_s22 = ssub.s32 %s472_s19, %s525_s20  ;;  %p77_p0 = scmp.ne.s32.totalorder %s468_s18, %s464_s17 }
   0xb   : > { %p68_p1 = scmp.eq.s32.totalorder %s67_s22, 0  ;;  %p78_p2 = scmp.eq.s32.totalorder %s472_s19, 0 }
   0xc   : > { %p83_p3 = scmp.ne.s32.totalorder %s464_s17, %s460_s16  ;;  %p84_p4 = scmp.eq.s32.totalorder %s521_s0, 0 }
   0xd   : > { %s537_s23 = scalar_select %p68_p1, %s468_s18, %s70_s21  }
   0xe   : > { %p539_p5 = por %p78_p2, %p77_p0  ;;  %p543_p6 = por %p84_p4, %p83_p3 }
   0xf   : > { %p107_p7 = scmp.eq.s32.totalorder %s521_s0, 1  ;;  %p113_p8 = scmp.eq.s32.totalorder %s314_s1, 1 }
  0x10   : > { %p342_p10 = scmp.lt.s32.totalorder %s472_s19, 2  ;;  %s139_s28 = sand.u32 1, %s468_s18  }
  0x11   : > { %p550_p11 = por %p107_p7, %p77_p0  ;;  %p554_p12 = por %p113_p8, %p83_p3 }
  0x12   : > { %s328_s29 = sshll.u32 %s472_s19, 6  ;;  %s317_s30 = sshll.u32 %s139_s28, 6 }
  0x13   : > { %s148_s6 = scalar_lea.hbm %s633_s2, %s328_s29  ;;  %s143_s8 = scalar_lea.vmem [#allocation4], %s317_s30 }
  0x14   : > { %s150_s7 = sshll.u32 %s148_s6, 4  ;;  %s152_s9 = sshll.u32 %s143_s8, 4  ;;  %s151_s7 = int_to_ptr.hbm [resolvable:$true] %s150_s7  ;;  %s153_s9 = int_to_ptr.vmem [resolvable:$true] %s152_s9 }
  0x15   : > { %p565_p13 = pnand %p342_p10, %p539_p5  ;;  %p320_p0 = scmp.ge.s32.totalorder %s472_s19, 1 }
  0x16   : > { %p157_p1 = scmp.lt.s32.totalorder %s472_s19, 3  ;;  %s140_s11 = scalar_lea.sflag [#allocation5], %s139_s28 }
  0x17   : > { %s376_s12 = sshra.s32 %s151_s7, 4  ;;  %p380_p3 = pneg %p565_p13  ;;  %s377_s12 = int_to_ptr.hbm [resolvable:$true] %s376_s12 }
  0x18   : > { %s378_s13 = scalar_lea.hbm %s377_s12, 64  ;;  %s383_s1 = scalar_lea.hbm %s633_s2, 128 }
  0x19   : > { %p379_p2 = scmp.ne.s32.totalorder %s377_s12, %s378_s13  ;;  %p384_p5 = scmp.lt.s32.totalorder %s377_s12, %s633_s2 }
  0x1a   : > { %p385_p8 = scmp.lt.s32.totalorder %s383_s1, %s378_s13 }
  0x1b   : > { %p381_p4 = pnand %p380_p3, %p379_p2 }
  0x1c   : > { %p386_p10 = por %p385_p8, %p384_p5 }
  0x1d   : > { %p382_p7 = pneg %p381_p4 }
  0x1f   : > { %p387_p9 = pnand %p386_p10, %p382_p7 }
  0x21   : > { %390 = shalt.err (!%p387_p9)
}
  0x22   : > { %337 = dma.hbm_to_vmem [thread:$0]  (!%p565_p13), %s151_s7, 1024, %s153_s9, %s140_s11  }
  0x23   : > { %p158_p2 = pnand %p320_p0, %p157_p1 }
  0x24   : > { %s586_s24 = sand.u32 (!%p158_p2), 1, %s464_s17  }
  0x25   : > { %161 = sbr.rel (%p158_p2) target bundleno = 64 (0x40), region = 32  ;;  %s321_s28 = sshll.u32 (!%p158_p2), %s586_s24, 6 }
  0x26   : > { %s164_s29 = scalar_lea.sflag (!%p158_p2), [#allocation5], %s586_s24  ;;  %s167_s30 = scalar_lea.vmem (!%p158_p2), [#allocation4], %s321_s28 }
  0x2a   : > { %451 = dma.done.wait (%p543_p6), %s164_s29, 1024  }
  0x2b   : > { %453 = vsyncadd (%p543_p6), %s164_s29, 4294966272  ;;  %s199_s4 = sld [smem:[#allocation2]]  ;;  %v191_v0 = vld [vmem:[%s167_s30] sm:$0xff]  ;;  %v192_v2 = vld [vmem:[%s167_s30 + $0x8] sm:$0xff]  ;;  %s329_s6 = sshll.u32 %s521_s0, 6 }
  0x2c   : > { %s209_s5 = sld [smem:[#allocation3]]  ;;  %v193_v3 = vld [vmem:[%s167_s30 + $0x10] sm:$0xff]  ;;  %v194_v8 = vld [vmem:[%s167_s30 + $0x18] sm:$0xff]  ;;  %v195_v9 = vld [vmem:[%s167_s30 + $0x20] sm:$0xff]  ;;  %s239_s8 = scalar_lea.hbm %s634_s3, %s329_s6 }
  0x2d   : > { %v196_v10 = vld [vmem:[%s167_s30 + $0x28] sm:$0xff]  ;;  %v197_v14 = vld [vmem:[%s167_s30 + $0x30] sm:$0xff]  ;;  %v198_v15 = vld [vmem:[%s167_s30 + $0x38] sm:$0xff]  ;;  %s190_s9 = scalar_lea.vmem [#allocation7], %s321_s28  ;;  %s243_s10 = sshll.u32 %s239_s8, 4  ;;  %s244_s10 = int_to_ptr.hbm [resolvable:$true] %s243_s10 }
  0x2e   : > { %s241_s0 = sshll.u32 %s190_s9, 4  ;;  %s228_s11 = scalar_lea.sflag [#allocation6], %s586_s24  ;;  %s242_s0 = int_to_ptr.vmem [resolvable:$true] %s241_s0 }
  0x2f   : > { %s420_s12 = sshra.s32 %s244_s10, 4  ;;  %s426_s1 = scalar_lea.hbm %s634_s3, 128  ;;  %s421_s12 = int_to_ptr.hbm [resolvable:$true] %s420_s12 }
  0x30   : > { %s422_s13 = scalar_lea.hbm %s421_s12, 64  ;;  %p427_p0 = scmp.lt.s32.totalorder %s421_s12, %s634_s3 }
  0x31   : > { %v200_v1 = vstv %s199_s4  ;;  %p423_p6 = scmp.ne.s32.totalorder %s421_s12, %s422_s13  ;;  %p428_p1 = scmp.lt.s32.totalorder %s426_s1, %s422_s13 }
  0x32   : > { %v201_v4 = vmul.f32 %v200_v1, %v191_v0  ;;  %v210_v5 = vstv %s209_s5  ;;  %v202_v6 = vmul.f32 %v200_v1, %v192_v2  ;;  %v203_v7 = vmul.f32 %v200_v1, %v193_v3 }
  0x33   : > { %v204_v11 = vmul.f32 %v200_v1, %v194_v8  ;;  %v205_v12 = vmul.f32 %v200_v1, %v195_v9  ;;  %v206_v13 = vmul.f32 %v200_v1, %v196_v10  ;;  %v207_v19 = vmul.f32 %v200_v1, %v197_v14  ;;  %p424_p9 = pnand %p423_p6, %p550_p11  ;;  %p429_p3 = por %p428_p1, %p427_p0 }
  0x34   : > { %v211_v16 = vadd.f32 %v210_v5, %v201_v4  ;;  %v212_v17 = vadd.f32 %v210_v5, %v202_v6  ;;  %v213_v18 = vadd.f32 %v210_v5, %v203_v7  ;;  %v208_v21 = vmul.f32 %v200_v1, %v198_v15 }
  0x35   : > { %v214_v20 = vadd.f32 %v210_v5, %v204_v11  ;;  %v215_v22 = vadd.f32 %v210_v5, %v205_v12  ;;  %v216_v23 = vadd.f32 %v210_v5, %v206_v13  ;;  %v217_v24 = vadd.f32 %v210_v5, %v207_v19  ;;  %p425_p13 = pneg %p424_p9 }
  0x36   : > { %219 = vst [vmem:[%s190_s9] sm:$0xff] %v211_v16  ;;  %v218_v25 = vadd.f32 %v210_v5, %v208_v21 }
  0x37   : > { %220 = vst [vmem:[%s190_s9 + $0x8] sm:$0xff] %v212_v17  ;;  %p430_p4 = pnand %p429_p3, %p425_p13 }
  0x38   : > { %221 = vst [vmem:[%s190_s9 + $0x10] sm:$0xff] %v213_v18 }
  0x39   : > { %222 = vst [vmem:[%s190_s9 + $0x18] sm:$0xff] %v214_v20 }
  0x3a   : > { %223 = vst [vmem:[%s190_s9 + $0x20] sm:$0xff] %v215_v22 }
  0x3b   : > { %224 = vst [vmem:[%s190_s9 + $0x28] sm:$0xff] %v216_v23 }
  0x3c   : > { %225 = vst [vmem:[%s190_s9 + $0x30] sm:$0xff] %v217_v24 }
  0x3d   : > { %226 = vst [vmem:[%s190_s9 + $0x38] sm:$0xff] %v218_v25 }
  0x3e   : > { %433 = shalt.err (!%p430_p4)
}
  0x3f   : > { %332 = dma.vmem_to_hbm [thread:$0]  (%p550_p11), %s242_s0, 1024, %s244_s10, %s228_s11  }
  0x40 PF: > { %s255_s24 = sand.u32 1, %s460_s16   ;;  %p640_p7 = scmp.ge.s32.totalorder %s472_s19, 2 }
  0x41   : > { %s256_s28 = scalar_lea.sflag [#allocation6], %s255_s24 }
  0x42   : > { %p339_p5 = pnand %p640_p7, %p554_p12 }
  0x44   : > { %p340_p8 = pneg %p339_p5 }
  0x46   : > { %455 = dma.done.wait (%p340_p8), %s256_s28, 1024  }
  0x47   : > { %457 = vsyncadd (%p340_p8), %s256_s28, 4294966272  ;;  %p18_p10 = scmp.ge.s32.totalorder %s525_s20, 4   ;;  %s641_s16 = smov %s464_s17 }
  0x48   : > { %s642_s17 = smov %s468_s18  ;;  %s643_s18 = smov %s537_s23 }
  0x49   : > { %s644_s19 = smov %s525_s20  ;;  %20 = sbr.rel (!%p18_p10) target bundleno = 8 (0x8), region = 77 }
  0x4e   :  { %262 = vsyncpa [#allocation5], 1 }
  0x4f   :  { %264 = vsyncpa [#allocation5 + $0x1], 1 }
  0x50   :  { %265 = vsyncpa [#allocation6], 1 }
  0x51   :  { %267 = vsyncpa [#allocation6 + $0x1], 1 }

</bundles_post_ra>
